<compile_context>
chip_gen: v6e
topology: v6e:2x2x1
jax: 0.10.0
libtpu: 0.0.40
codegen_flags: <defaults>
</compile_context>

<pallas_src>
import functools

import jax
import jax.numpy as jnp
from jax.experimental import pallas as pl
from jax.experimental.pallas import tpu as pltpu


# ---------------------------------------------------------------------------
# Fused Pallas kernel: two linears + 3-way mix, single pass
# ---------------------------------------------------------------------------
def _fused_mix_kernel(x_ref, z1_ref, z2_ref, w1_ref, w2_ref, b1_ref, b2_ref,
                      out_ref, r1_ref, r2_ref, *, compute_dtype):
    # MXU matmuls with f32 accumulation; operands optionally cast to bf16.
    z1 = z1_ref[...].astype(compute_dtype)
    z2 = z2_ref[...].astype(compute_dtype)
    w1 = w1_ref[...].astype(compute_dtype)
    w2 = w2_ref[...].astype(compute_dtype)

    r1 = jnp.dot(z1, w1, preferred_element_type=jnp.float32) + b1_ref[...]
    r2 = jnp.dot(z2, w2, preferred_element_type=jnp.float32) + b2_ref[...]

    # Emit the per-net cached results (net.res semantics preserved).
    r1_ref[...] = r1.astype(r1_ref.dtype)
    r2_ref[...] = r2.astype(r2_ref.dtype)
    # Mix output fused into the epilogue: each tile is written exactly once.
    out_ref[...] = (x_ref[...].astype(jnp.float32) + r1 + r2).astype(out_ref.dtype)


def _pick_tile_b(B):
    # Biggest batch tile that evenly divides B (keeps VMEM use small;
    # at production sizes this gives real pipelining / dual-TC sharding).
    for cand in (512, 256, 128, 64, 32, 16, 8):
        if B % cand == 0:
            return cand
    return B  # tiny / ragged batch: single full block


def fused_linear_mix(x, z1, w1, b1, z2, w2, b2, *, tile_b=None,
                     compute_dtype=jnp.float32):
    """One pallas_call computing (mix_out, net1_res, net2_res)."""
    B, D = x.shape
    Din = z1.shape[1]
    assert z1.shape == (B, Din) and z2.shape == (B, Din)
    assert w1.shape == (Din, D) and w2.shape == (Din, D)
    assert b1.shape == (D,) and b2.shape == (D,)

    if tile_b is None:
        tile_b = _pick_tile_b(B)
    assert B % tile_b == 0
    grid = (B // tile_b,)

    b1r = b1.reshape(1, D)
    b2r = b2.reshape(1, D)

    kernel = functools.partial(_fused_mix_kernel, compute_dtype=compute_dtype)

    act_spec = pl.BlockSpec((tile_b, D), lambda i: (i, 0))     # x / outputs
    zin_spec = pl.BlockSpec((tile_b, Din), lambda i: (i, 0))   # net inputs
    w_spec = pl.BlockSpec((Din, D), lambda i: (0, 0))          # resident weights
    b_spec = pl.BlockSpec((1, D), lambda i: (0, 0))            # resident biases

    out_shapes = (
        jax.ShapeDtypeStruct((B, D), x.dtype),   # mix output
        jax.ShapeDtypeStruct((B, D), x.dtype),   # net1.res
        jax.ShapeDtypeStruct((B, D), x.dtype),   # net2.res
    )

    return pl.pallas_call(
        kernel,
        out_shape=out_shapes,
        grid=grid,
        in_specs=[act_spec, zin_spec, zin_spec, w_spec, w_spec, b_spec, b_spec],
        out_specs=(act_spec, act_spec, act_spec),
        compiler_params=pltpu.CompilerParams(
            dimension_semantics=("parallel",),          # v7x: shard batch over 2 TCs
            vmem_limit_bytes=32 * 1024 * 1024),         # safe on v7x's 64 MiB VMEM
    )(x, z1, z2, w1, w2, b1r, b2r)


# ---------------------------------------------------------------------------
# Module-level glue (mirrors the PyTorch classes)
# ---------------------------------------------------------------------------
class LinearNet:
    """Sub-net parameter container; `.res` caches its last result."""

    def __init__(self, w, b):
        self.w = w
        self.b = b
        self.res = None


class Mix:
    """Faithful port of mlmisc.args_sequential.Mix (generic path)."""

    def __init__(self, func, *nets):
        self.func = func
        self.nets = nets
        self.res = None

    def forward(self, *args):
        fargs = args + tuple(net.res for net in self.nets)
        self.res = self.func(*fargs)
        return self.res

    __call__ = forward

    def extra_repr(self):
        return ',\n'.join(repr(net) for net in self.nets)


def mix_forward_fused(mix, x, z1, z2, *, compute_dtype=jnp.float32, tile_b=None):
    """Fast path: one fused kernel populates net.res caches AND the mix result."""
    n1, n2 = mix.nets
    out, r1, r2 = fused_linear_mix(x, z1, n1.w, n1.b, z2, n2.w, n2.b,
                                   compute_dtype=compute_dtype, tile_b=tile_b)
    n1.res, n2.res = r1, r2
    mix.res = out
    return out


def _sum3(a, b, c):
    # Generic `func` for the faithful Mix.forward path (operates on already
    # materialized .res caches). Kept as plain jnp: per the v5e note, a
    # standalone 3-load/1-store elementwise Pallas kernel is not worth it.
    return a + b + c


# ---------------------------------------------------------------------------
# Demo / self-check
# ---------------------------------------------------------------------------
if __name__ == "__main__":
    B, Din, D = 64, 32, 128

    key = jax.random.PRNGKey(0)
    kx, kz1, kz2, kw1, kb1, kw2, kb2 = jax.random.split(key, 7)

    w1 = jax.random.normal(kw1, (Din, D), jnp.float32) / jnp.sqrt(Din)
    b1 = jax.random.normal(kb1, (D,), jnp.float32) * 0.01
    w2 = jax.random.normal(kw2, (Din, D), jnp.float32) / jnp.sqrt(Din)
    b2 = jax.random.normal(kb2, (D,), jnp.float32) * 0.01

    x = jax.random.normal(kx, (B, D), jnp.float32)      # forward arg to Mix
    z1 = jax.random.normal(kz1, (B, Din), jnp.float32)  # input to net 1
    z2 = jax.random.normal(kz2, (B, Din), jnp.float32)  # input to net 2

    net1 = LinearNet(w1, b1)
    net2 = LinearNet(w2, b2)
    mix = Mix(_sum3, net1, net2)

    # Fused hot path: one pallas_call computes net1.res, net2.res and the mix.
    out = mix_forward_fused(mix, x, z1, z2)
    out = jax.block_until_ready(out)

    # Pure-JAX reference.
    r1_ref = z1 @ w1 + b1
    r2_ref = z2 @ w2 + b2
    ref = x + r1_ref + r2_ref

    assert out.shape == (B, D)
    assert jnp.allclose(out, ref, atol=1e-4, rtol=1e-4)
    assert jnp.allclose(net1.res, r1_ref, atol=1e-4, rtol=1e-4)
    assert jnp.allclose(net2.res, r2_ref, atol=1e-4, rtol=1e-4)
    assert mix.res is out  # Mix caches its result, like the PyTorch module.

    # Faithful Mix.forward path (func over cached .res) matches the fused path.
    out_faithful = jax.block_until_ready(mix(x))
    assert jnp.allclose(out_faithful, out, atol=1e-5, rtol=1e-5)

    # Multi-tile grid path (batch tiled, grid > 1) matches as well.
    out_tiled, _, _ = fused_linear_mix(x, z1, w1, b1, z2, w2, b2, tile_b=16)
    out_tiled = jax.block_until_ready(out_tiled)
    assert jnp.allclose(out_tiled, ref, atol=1e-4, rtol=1e-4)

    # Optional bf16-operand mode (f32 accumulation), looser tolerance.
    out_bf16, _, _ = fused_linear_mix(x, z1, w1, b1, z2, w2, b2,
                                      compute_dtype=jnp.bfloat16)
    out_bf16 = jax.block_until_ready(out_bf16)
    assert jnp.allclose(out_bf16, ref, atol=1e-1, rtol=5e-2)

    print("KERNEL_OK")
</pallas_src>

<mosaic_0001>
module attributes {stable_mosaic.version = 11 : i64} {
  func.func @_fused_mix_kernel(%arg0: i32, %arg1: memref<64x128xf32, #tpu.memory_space<vmem>>, %arg2: memref<64x32xf32, #tpu.memory_space<vmem>>, %arg3: memref<64x32xf32, #tpu.memory_space<vmem>>, %arg4: memref<32x128xf32, #tpu.memory_space<vmem>>, %arg5: memref<32x128xf32, #tpu.memory_space<vmem>>, %arg6: memref<1x128xf32, #tpu.memory_space<vmem>>, %arg7: memref<1x128xf32, #tpu.memory_space<vmem>>, %arg8: memref<64x128xf32, #tpu.memory_space<vmem>>, %arg9: memref<64x128xf32, #tpu.memory_space<vmem>>, %arg10: memref<64x128xf32, #tpu.memory_space<vmem>>) attributes {dimension_semantics = [#tpu.dimension_semantics<parallel>], iteration_bounds = array<i64: 1>, scalar_prefetch = 0 : i64, scratch_operands = 0 : i64, tpu.core_type = #tpu.core_type<tc>, window_params = [{transform_indices = @transform_0, window_bounds = array<i64: 64, 128>}, {transform_indices = @transform_1, window_bounds = array<i64: 64, 32>}, {transform_indices = @transform_2, window_bounds = array<i64: 64, 32>}, {pipeline_mode = #tpu.pipeline_mode<synchronous>, transform_indices = @transform_3, window_bounds = array<i64: 32, 128>}, {pipeline_mode = #tpu.pipeline_mode<synchronous>, transform_indices = @transform_4, window_bounds = array<i64: 32, 128>}, {pipeline_mode = #tpu.pipeline_mode<synchronous>, transform_indices = @transform_5, window_bounds = array<i64: 1, 128>}, {pipeline_mode = #tpu.pipeline_mode<synchronous>, transform_indices = @transform_6, window_bounds = array<i64: 1, 128>}, {transform_indices = @transform_7, window_bounds = array<i64: 64, 128>}, {transform_indices = @transform_8, window_bounds = array<i64: 64, 128>}, {transform_indices = @transform_9, window_bounds = array<i64: 64, 128>}]} {
    %c0 = arith.constant 0 : index
    %c0_0 = arith.constant 0 : index
    %0 = vector.load %arg2[%c0, %c0_0] : memref<64x32xf32, #tpu.memory_space<vmem>>, vector<64x32xf32>
    %c0_1 = arith.constant 0 : index
    %c0_2 = arith.constant 0 : index
    %1 = vector.load %arg3[%c0_1, %c0_2] : memref<64x32xf32, #tpu.memory_space<vmem>>, vector<64x32xf32>
    %c0_3 = arith.constant 0 : index
    %c0_4 = arith.constant 0 : index
    %2 = vector.load %arg4[%c0_3, %c0_4] : memref<32x128xf32, #tpu.memory_space<vmem>>, vector<32x128xf32>
    %c0_5 = arith.constant 0 : index
    %c0_6 = arith.constant 0 : index
    %3 = vector.load %arg5[%c0_5, %c0_6] : memref<32x128xf32, #tpu.memory_space<vmem>>, vector<32x128xf32>
    %cst = arith.constant dense<0.000000e+00> : vector<64x128xf32>
    %4 = tpu.matmul %0, %2, %cst {dimension_numbers = #tpu.dot_dimension_numbers<[1], [0], [0], [1], [0, 0, 1, 1], [], []>} : vector<64x32xf32>, vector<32x128xf32>, vector<64x128xf32> -> vector<64x128xf32>
    %c0_7 = arith.constant 0 : index
    %c0_8 = arith.constant 0 : index
    %5 = vector.load %arg6[%c0_7, %c0_8] : memref<1x128xf32, #tpu.memory_space<vmem>>, vector<1x128xf32>
    %6 = vector.broadcast %5 : vector<1x128xf32> to vector<64x128xf32>
    %7 = arith.addf %4, %6 : vector<64x128xf32>
    %cst_9 = arith.constant dense<0.000000e+00> : vector<64x128xf32>
    %8 = tpu.matmul %1, %3, %cst_9 {dimension_numbers = #tpu.dot_dimension_numbers<[1], [0], [0], [1], [0, 0, 1, 1], [], []>} : vector<64x32xf32>, vector<32x128xf32>, vector<64x128xf32> -> vector<64x128xf32>
    %c0_10 = arith.constant 0 : index
    %c0_11 = arith.constant 0 : index
    %9 = vector.load %arg7[%c0_10, %c0_11] : memref<1x128xf32, #tpu.memory_space<vmem>>, vector<1x128xf32>
    %10 = vector.broadcast %9 : vector<1x128xf32> to vector<64x128xf32>
    %11 = arith.addf %8, %10 : vector<64x128xf32>
    %c0_12 = arith.constant 0 : index
    %c0_13 = arith.constant 0 : index
    %12 = vector.load %arg9[%c0_12, %c0_13] : memref<64x128xf32, #tpu.memory_space<vmem>>, vector<64x128xf32>
    tpu.vector_store %arg9[%c0_12, %c0_13], %7 {strides = array<i32>} : memref<64x128xf32, #tpu.memory_space<vmem>>, vector<64x128xf32>,
    %c0_14 = arith.constant 0 : index
    %c0_15 = arith.constant 0 : index
    %13 = vector.load %arg10[%c0_14, %c0_15] : memref<64x128xf32, #tpu.memory_space<vmem>>, vector<64x128xf32>
    tpu.vector_store %arg10[%c0_14, %c0_15], %11 {strides = array<i32>} : memref<64x128xf32, #tpu.memory_space<vmem>>, vector<64x128xf32>,
    %c0_16 = arith.constant 0 : index
    %c0_17 = arith.constant 0 : index
    %14 = vector.load %arg1[%c0_16, %c0_17] : memref<64x128xf32, #tpu.memory_space<vmem>>, vector<64x128xf32>
    %15 = arith.addf %14, %7 : vector<64x128xf32>
    %16 = arith.addf %15, %11 : vector<64x128xf32>
    %c0_18 = arith.constant 0 : index
    %c0_19 = arith.constant 0 : index
    %17 = vector.load %arg8[%c0_18, %c0_19] : memref<64x128xf32, #tpu.memory_space<vmem>>, vector<64x128xf32>
    tpu.vector_store %arg8[%c0_18, %c0_19], %16 {strides = array<i32>} : memref<64x128xf32, #tpu.memory_space<vmem>>, vector<64x128xf32>,
    return
  }
  func.func @transform_0(%arg0: i32) -> (i32, i32) {
    %c0_i32 = arith.constant 0 : i32
    %c0_i32_0 = arith.constant 0 : i32
    return %arg0, %c0_i32 : i32, i32
  }
  func.func @transform_1(%arg0: i32) -> (i32, i32) {
    %c0_i32 = arith.constant 0 : i32
    %c0_i32_0 = arith.constant 0 : i32
    return %arg0, %c0_i32 : i32, i32
  }
  func.func @transform_2(%arg0: i32) -> (i32, i32) {
    %c0_i32 = arith.constant 0 : i32
    %c0_i32_0 = arith.constant 0 : i32
    return %arg0, %c0_i32 : i32, i32
  }
  func.func @transform_3(%arg0: i32) -> (i32, i32) {
    %c0_i32 = arith.constant 0 : i32
    %c0_i32_0 = arith.constant 0 : i32
    %c0_i32_1 = arith.constant 0 : i32
    return %c0_i32, %c0_i32_0 : i32, i32
  }
  func.func @transform_4(%arg0: i32) -> (i32, i32) {
    %c0_i32 = arith.constant 0 : i32
    %c0_i32_0 = arith.constant 0 : i32
    %c0_i32_1 = arith.constant 0 : i32
    return %c0_i32, %c0_i32_0 : i32, i32
  }
  func.func @transform_5(%arg0: i32) -> (i32, i32) {
    %c0_i32 = arith.constant 0 : i32
    %c0_i32_0 = arith.constant 0 : i32
    %c0_i32_1 = arith.constant 0 : i32
    return %c0_i32, %c0_i32_0 : i32, i32
  }
  func.func @transform_6(%arg0: i32) -> (i32, i32) {
    %c0_i32 = arith.constant 0 : i32
    %c0_i32_0 = arith.constant 0 : i32
    %c0_i32_1 = arith.constant 0 : i32
    return %c0_i32, %c0_i32_0 : i32, i32
  }
  func.func @transform_7(%arg0: i32) -> (i32, i32) {
    %c0_i32 = arith.constant 0 : i32
    %c0_i32_0 = arith.constant 0 : i32
    return %arg0, %c0_i32 : i32, i32
  }
  func.func @transform_8(%arg0: i32) -> (i32, i32) {
    %c0_i32 = arith.constant 0 : i32
    %c0_i32_0 = arith.constant 0 : i32
    return %arg0, %c0_i32 : i32, i32
  }
  func.func @transform_9(%arg0: i32) -> (i32, i32) {
    %c0_i32 = arith.constant 0 : i32
    %c0_i32_0 = arith.constant 0 : i32
    return %arg0, %c0_i32 : i32, i32
  }
}

</mosaic_0001>

<bundles_post_ra>
// kernel: tpu_custom_call.1
= control target key start
LH: loop header
LB: loop body
LE: loop exit
PB: predicated region body
PF: predicated region fallthrough
CT: control target
= control target key end

     0   :  { %15 = vsyncpa [#allocation3], 0  ;;  %vm62_vm0 = vcmask 261120   ;;  %s790_s0 = inlined_call_operand.vmem [shape: f32[64,128], index: 0, kind: input, shape index: {}]   ;;  %s791_s1 = inlined_call_operand.vmem [shape: f32[64,32], index: 1, kind: input, shape index: {}]   ;;  %s792_s2 = inlined_call_operand.vmem [shape: f32[64,32], index: 2, kind: input, shape index: {}]   ;;  %s793_s3 = inlined_call_operand.vmem [shape: f32[32,128], index: 3, kind: input, shape index: {}]   ;;  %s794_s4 = inlined_call_operand.vmem [shape: f32[32,128], index: 4, kind: input, shape index: {}]   ;;  %s795_s5 = inlined_call_operand.vmem [shape: f32[1,128], index: 5, kind: input, shape index: {}]   ;;  %s796_s6 = inlined_call_operand.vmem [shape: f32[1,128], index: 6, kind: input, shape index: {}]   ;;  %s797_s7 = inlined_call_operand.hbm [shape: f32[64,128], index: 7, kind: output, shape index: {0}]   ;;  %s798_s8 = inlined_call_operand.hbm [shape: f32[64,128], index: 8, kind: output, shape index: {1}]   ;;  %s799_s9 = inlined_call_operand.hbm [shape: f32[64,128], index: 9, kind: output, shape index: {2}]  }
   0x1   :  { %v50_v0 = vld [vmem:[%s793_s3 + $0x18] sm:$0xff]  ;;  %v49_v2 = vld [vmem:[%s793_s3 + $0x10] sm:$0xff]  ;;  %v48_v4 = vld [vmem:[%s793_s3 + $0x8] sm:$0xff] }
   0x2   :  { %v54_v1 = vld [vmem:[%s794_s4 + $0x18] sm:$0xff]  ;;  %465 = vmatprep.subr.mxu0 %v50_v0  ;;  %v53_v3 = vld [vmem:[%s794_s4 + $0x10] sm:$0xff]  ;;  %v52_v5 = vld [vmem:[%s794_s4 + $0x8] sm:$0xff] }
   0x3   :  { %485 = vmatprep.subr.mxu1 %v54_v1  ;;  %466 = vmatpush3.msra.mxu0 %v50_v0  ;;  %v47_v6 = vld [vmem:[%s793_s3] sm:$0xff]  ;;  %v32_v10 = vld [vmem:[%s791_s1 + $0x8] sm:$0xff]  ;;  %v33_v12 = vld [vmem:[%s791_s1 + $0x10] sm:$0xff] }
   0x4   :  { %486 = vmatpush3.msra.mxu1 %v54_v1  ;;  %467 = vmatprep.subr.mxu0 %v49_v2  ;;  %v51_v7 = vld [vmem:[%s794_s4] sm:$0xff]  ;;  %v40_v11 = vld [vmem:[%s792_s2 + $0x8] sm:$0xff]  ;;  %v41_v13 = vld [vmem:[%s792_s2 + $0x10] sm:$0xff] }
   0x5   :  { %487 = vmatprep.subr.mxu1 %v53_v3  ;;  %468 = vmatpush3.msra.mxu0 %v49_v2  ;;  %v31_v8 = vld [vmem:[%s791_s1] sm:$0xff] }
   0x6   :  { %488 = vmatpush3.msra.mxu1 %v53_v3  ;;  %469 = vmatprep.subr.mxu0 %v48_v4  ;;  %v39_v9 = vld [vmem:[%s792_s2] sm:$0xff] }
   0x7   :  { %489 = vmatprep.subr.mxu1 %v52_v5  ;;  %470 = vmatpush3.msra.mxu0 %v48_v4 }
   0x8   :  { %490 = vmatpush3.msra.mxu1 %v52_v5  ;;  %471 = vmatprep.subr.mxu0 %v47_v6 }
   0x9   :  { %491 = vmatprep.subr.mxu1 %v51_v7  ;;  %472 = vmatpush3.msra.mxu0 %v47_v6 }
   0xa   :  { %473 = vmatprep.mubr.msk.f32.mxu0 %vm62_vm0, %v31_v8 }
   0xb   :  { %16 = vsyncpa [#allocation5], 0  ;;  %492 = vmatpush3.msra.mxu1 %v51_v7  ;;  %493 = vmatprep.mubr.msk.f32.mxu1 %vm62_vm0, %v39_v9  ;;  %v34_v14 = vld [vmem:[%s791_s1 + $0x18] sm:$0xff]  ;;  %v35_v16 = vld [vmem:[%s791_s1 + $0x20] sm:$0xff]  ;;  %s574_s25 = smov [#allocation4]   ;;  %s575_s27 = smov [#allocation6]  }
   0xc   :  { %474 = vmatmul.mubr.msk.f32.vlgmr.msra.gmra.mxu0 %vm62_vm0, %v32_v10  ;;  %494 = vmatmul.mubr.msk.f32.vlgmr.msra.gmra.mxu1 %vm62_vm0, %v40_v11  ;;  %v42_v15 = vld [vmem:[%s792_s2 + $0x18] sm:$0xff]  ;;  %v43_v17 = vld [vmem:[%s792_s2 + $0x20] sm:$0xff]  ;;  %v36_v18 = vld [vmem:[%s791_s1 + $0x28] sm:$0xff]  ;;  %s393_s26 = sshll.u32 %s574_s25, 4  ;;  %s405_s28 = sshll.u32 %s575_s27, 4  ;;  %s394_s26 = int_to_ptr.vmem [resolvable:$true] %s393_s26  ;;  %s767_s28 = int_to_ptr.vmem [resolvable:$true] %s405_s28 }
   0xd   :  { %476 = vmatprep.mubr.msk.f32.mxu0 %vm62_vm0, %v33_v12  ;;  %496 = vmatprep.mubr.msk.f32.mxu1 %vm62_vm0, %v41_v13  ;;  %v44_v19 = vld [vmem:[%s792_s2 + $0x28] sm:$0xff]  ;;  %v37_v20 = vld [vmem:[%s791_s1 + $0x30] sm:$0xff]  ;;  %v38_v22 = vld [vmem:[%s791_s1 + $0x38] sm:$0xff]  ;;  %s576_s4 = smov [#allocation2]   ;;  %p515_p1 = scmp.lt.s32.totalorder %s394_s26, %s394_s26 }
   0xe   :  { %v45_v21 = vld [vmem:[%s792_s2 + $0x30] sm:$0xff]  ;;  %v46_v23 = vld [vmem:[%s792_s2 + $0x38] sm:$0xff]  ;;  %v720_v24 = vld [vmem:[%s795_s5] ss:$0 sm:$0xff]  ;;  %s381_s30 = sshll.u32 %s576_s4, 4  ;;  %s769_s30 = int_to_ptr.vmem [resolvable:$true] %s381_s30 }
   0xf   :  { %v725_v25 = vld [vmem:[%s796_s6] ss:$0 sm:$0xff]  ;;  %v345_v27 = vld [vmem:[%s790_s0 + $0x8] sm:$0xff]  ;;  %v347_v38 = vld [vmem:[%s790_s0 + $0x18] sm:$0xff] }
  0x10   :  { %477 = vmatmul.mubr.msk.f32.gmra.mxu0 %vm62_vm0, %v34_v14  ;;  %497 = vmatmul.mubr.msk.f32.gmra.mxu1 %vm62_vm0, %v42_v15  ;;  %v344_v32 = vld [vmem:[%s790_s0] sm:$0xff]  ;;  %v346_v45 = vld [vmem:[%s790_s0 + $0x10] sm:$0xff]  ;;  %v349_v52 = vld [vmem:[%s790_s0 + $0x28] sm:$0xff] }
  0x11   :  { %479 = vmatprep.mubr.msk.f32.mxu0 %vm62_vm0, %v35_v16  ;;  %499 = vmatprep.mubr.msk.f32.mxu1 %vm62_vm0, %v43_v17  ;;  %v348_v59 = vld [vmem:[%s790_s0 + $0x20] sm:$0xff]  ;;  %v351_v2 = vld [vmem:[%s790_s0 + $0x38] sm:$0xff]  ;;  %v350_v9 = vld [vmem:[%s790_s0 + $0x30] sm:$0xff]  ;;  %s510_s0 = scalar_lea.vmem %s394_s26, 1024 }
  0x12   :  { %p511_p0 = scmp.ne.s32.totalorder %s394_s26, %s510_s0  ;;  %p516_p2 = scmp.lt.s32.totalorder %s510_s0, %s510_s0 }
  0x14   :  { %480 = vmatmul.mubr.msk.f32.gmra.mxu0 %vm62_vm0, %v36_v18  ;;  %500 = vmatmul.mubr.msk.f32.gmra.mxu1 %vm62_vm0, %v44_v19  ;;  %p517_p3 = por %p516_p2, %p515_p1 }
  0x15   :  { %482 = vmatprep.mubr.msk.f32.mxu0 %vm62_vm0, %v37_v20  ;;  %502 = vmatprep.mubr.msk.f32.mxu1 %vm62_vm0, %v45_v21 }
  0x16   :  { %p518_p4 = pnand %p517_p3, %p511_p0 }
  0x18   :  { %483 = vmatmul.mubr.msk.f32.gmra.mxu0 %vm62_vm0, %v38_v22  ;;  %503 = vmatmul.mubr.msk.f32.gmra.mxu1 %vm62_vm0, %v46_v23 }
  0xcc   :  { %v475_v26 = vpop.f32.mrf.mxu0  ;;  %v495_v28 = vpop.f32.mrf.mxu1 }
  0xcd   :  { %v159_v29 = vadd.f32 %v475_v26, %v720_v24  ;;  %v295_v30 = vadd.f32 %v495_v28, %v725_v25 }
  0xce   :  { %v153_v31 = vpop.f32.mrf.mxu0  ;;  %v289_v33 = vpop.f32.mrf.mxu1 }
  0xcf   :  { %329 = vst [vmem:[#allocation4 + $0x8] sm:$0xff] %v159_v29  ;;  %v353_v34 = vadd.f32 %v345_v27, %v159_v29  ;;  %337 = vst [vmem:[#allocation6 + $0x8] sm:$0xff] %v295_v30  ;;  %v154_v35 = vadd.f32 %v720_v24, %v153_v31  ;;  %v290_v36 = vadd.f32 %v725_v25, %v289_v33 }
  0xd0   :  { %v478_v37 = vpop.f32.mrf.mxu0  ;;  %v498_v39 = vpop.f32.mrf.mxu1 }
  0xd1   :  { %v361_v40 = vadd.f32 %v353_v34, %v295_v30  ;;  %328 = vst [vmem:[#allocation4] sm:$0xff] %v154_v35  ;;  %v352_v41 = vadd.f32 %v344_v32, %v154_v35  ;;  %336 = vst [vmem:[#allocation6] sm:$0xff] %v290_v36  ;;  %v169_v42 = vadd.f32 %v478_v37, %v720_v24 }
  0xd2   :  { %v305_v43 = vadd.f32 %v498_v39, %v725_v25  ;;  %v163_v44 = vpop.f32.mrf.mxu0  ;;  %v299_v46 = vpop.f32.mrf.mxu1 }
  0xd3   :  { %369 = vst [vmem:[#allocation2 + $0x8] sm:$0xff] %v361_v40  ;;  %v360_v47 = vadd.f32 %v352_v41, %v290_v36  ;;  %331 = vst [vmem:[#allocation4 + $0x18] sm:$0xff] %v169_v42  ;;  %v355_v48 = vadd.f32 %v347_v38, %v169_v42  ;;  %v164_v49 = vadd.f32 %v720_v24, %v163_v44 }
  0xd4   :  { %339 = vst [vmem:[#allocation6 + $0x18] sm:$0xff] %v305_v43  ;;  %v300_v50 = vadd.f32 %v725_v25, %v299_v46  ;;  %v481_v51 = vpop.f32.mrf.mxu0  ;;  %v501_v53 = vpop.f32.mrf.mxu1 }
  0xd5   :  { %368 = vst [vmem:[#allocation2] sm:$0xff] %v360_v47  ;;  %v363_v54 = vadd.f32 %v355_v48, %v305_v43  ;;  %330 = vst [vmem:[#allocation4 + $0x10] sm:$0xff] %v164_v49  ;;  %v354_v55 = vadd.f32 %v346_v45, %v164_v49  ;;  %v179_v56 = vadd.f32 %v481_v51, %v720_v24 }
  0xd6   :  { %338 = vst [vmem:[#allocation6 + $0x10] sm:$0xff] %v300_v50  ;;  %v315_v57 = vadd.f32 %v501_v53, %v725_v25  ;;  %v173_v58 = vpop.f32.mrf.mxu0  ;;  %v309_v60 = vpop.f32.mrf.mxu1 }
  0xd7   :  { %371 = vst [vmem:[#allocation2 + $0x18] sm:$0xff] %v363_v54  ;;  %v362_v61 = vadd.f32 %v354_v55, %v300_v50  ;;  %333 = vst [vmem:[#allocation4 + $0x28] sm:$0xff] %v179_v56  ;;  %v357_v62 = vadd.f32 %v349_v52, %v179_v56  ;;  %v174_v63 = vadd.f32 %v720_v24, %v173_v58 }
  0xd8   :  { %341 = vst [vmem:[#allocation6 + $0x28] sm:$0xff] %v315_v57  ;;  %v310_v0 = vadd.f32 %v725_v25, %v309_v60  ;;  %v484_v1 = vpop.f32.mrf.mxu0  ;;  %v504_v3 = vpop.f32.mrf.mxu1 }
  0xd9   :  { %370 = vst [vmem:[#allocation2 + $0x10] sm:$0xff] %v362_v61  ;;  %v365_v4 = vadd.f32 %v357_v62, %v315_v57  ;;  %332 = vst [vmem:[#allocation4 + $0x20] sm:$0xff] %v174_v63  ;;  %v356_v5 = vadd.f32 %v348_v59, %v174_v63  ;;  %v189_v6 = vadd.f32 %v484_v1, %v720_v24 }
  0xda   :  { %340 = vst [vmem:[#allocation6 + $0x20] sm:$0xff] %v310_v0  ;;  %v325_v7 = vadd.f32 %v504_v3, %v725_v25  ;;  %v183_v8 = vpop.f32.mrf.mxu0  ;;  %v319_v10 = vpop.f32.mrf.mxu1 }
  0xdb   :  { %373 = vst [vmem:[#allocation2 + $0x28] sm:$0xff] %v365_v4  ;;  %v364_v11 = vadd.f32 %v356_v5, %v310_v0  ;;  %335 = vst [vmem:[#allocation4 + $0x38] sm:$0xff] %v189_v6  ;;  %v359_v12 = vadd.f32 %v351_v2, %v189_v6  ;;  %v184_v13 = vadd.f32 %v720_v24, %v183_v8 }
  0xdc   :  { %343 = vst [vmem:[#allocation6 + $0x38] sm:$0xff] %v325_v7  ;;  %v320_v14 = vadd.f32 %v725_v25, %v319_v10 }
  0xdd   :  { %372 = vst [vmem:[#allocation2 + $0x20] sm:$0xff] %v364_v11  ;;  %v367_v15 = vadd.f32 %v359_v12, %v325_v7  ;;  %334 = vst [vmem:[#allocation4 + $0x30] sm:$0xff] %v184_v13  ;;  %v358_v16 = vadd.f32 %v350_v9, %v184_v13 }
  0xde   :  { %342 = vst [vmem:[#allocation6 + $0x30] sm:$0xff] %v320_v14 }
  0xdf   :  { %521 = shalt.err (!%p518_p4)
}
  0xe0   :  { %s577_s10 = smov 128   ;;  %s578_s11 = smov 8   ;;  %375 = vst [vmem:[#allocation2 + $0x38] sm:$0xff] %v367_v15  ;;  %v366_v17 = vadd.f32 %v358_v16, %v320_v14 }
  0xe1   :  { %399 = dma.vmem_to_hbm [thread:$0]  %s394_s26, 1024, %s798_s8, [#allocation5], %s577_s10, %s577_s10, %s578_s11  }
  0xe2   :  { %s530_s14 = scalar_lea.vmem %s767_s28, 1024  ;;  %p535_p6 = scmp.lt.s32.totalorder %s767_s28, %s767_s28 }
  0xe3   :  { %p531_p5 = scmp.ne.s32.totalorder %s767_s28, %s530_s14  ;;  %p536_p7 = scmp.lt.s32.totalorder %s530_s14, %s530_s14 }
  0xe5   :  { %p537_p8 = por %p536_p7, %p535_p6 }
  0xe7   :  { %p538_p9 = pnand %p537_p8, %p531_p5 }
  0xe9   :  { %541 = shalt.err (!%p538_p9)
}
  0xea   :  { %411 = dma.vmem_to_hbm [thread:$0]  %s767_s28, 1024, %s799_s9, [#allocation5], %s577_s10, %s577_s10, %s578_s11   ;;  %374 = vst [vmem:[#allocation2 + $0x30] sm:$0xff] %v366_v17 }
  0xeb   :  { %s550_s8 = scalar_lea.vmem %s769_s30, 1024  ;;  %p555_p11 = scmp.lt.s32.totalorder %s769_s30, %s769_s30 }
  0xec   :  { %p551_p10 = scmp.ne.s32.totalorder %s769_s30, %s550_s8  ;;  %p556_p12 = scmp.lt.s32.totalorder %s550_s8, %s550_s8 }
  0xee   :  { %p557_p13 = por %p556_p12, %p555_p11 }
  0xf0   :  { %p558_p0 = pnand %p557_p13, %p551_p10 }
  0xf2   :  { %561 = shalt.err (!%p558_p0)
}
  0xf3   :  { %387 = dma.vmem_to_hbm [thread:$0]  %s769_s30, 1024, %s797_s7, [#allocation3], %s577_s10, %s577_s10, %s578_s11  }
  0xf4   :  { %570 = dma.done.wait [#allocation3], 1024  }
  0xf5   :  { %571 = vsyncadd [#allocation3], 4294966272 }
  0xf6   :  { %572 = dma.done.wait [#allocation5], 2048  }
  0xf7   :  { %573 = vsyncadd [#allocation5], 4294965248 }
  0xf8   :  { %421 = vsyncpa [#allocation3], 1 }
  0xf9   :  { %422 = vsyncpa [#allocation5], 1 }

</bundles_post_ra>
